<compile_context>
chip_gen: v6e
topology: v6e:2x2x1
jax: 0.10.0
libtpu: 0.0.40
codegen_flags: <defaults>
</compile_context>

<pallas_src>
import jax
import jax.numpy as jnp
from jax.experimental import pallas as pl
from jax.experimental.pallas import tpu as pltpu


def generator_kernel(z_ref, w1_ref, b1_ref, w2_ref, b2_ref, o_ref):
    # Hidden layer: (TB, Z)bf16 @ (Z, 128)bf16 -> f32 accumulate, + bias, ReLU
    h = jnp.dot(z_ref[...], w1_ref[...], preferred_element_type=jnp.float32)
    h = jnp.maximum(h + b1_ref[...], 0.0)
    # Output layer: (TB, 128)bf16 @ (128, D_pad)bf16 -> f32 accumulate, + bias, Tanh
    o = jnp.dot(h.astype(jnp.bfloat16), w2_ref[...],
                preferred_element_type=jnp.float32)
    o_ref[...] = jnp.tanh(o + b2_ref[...]).astype(o_ref.dtype)


def original_generator(z, w1, b1, w2, b2, *, max_tb=256):
    """Fused two-layer MLP generator forward pass.

    z:  (B, z_dim) float32
    w1: (z_dim, 128), b1: (1, 128)
    w2: (128, img_dim), b2: (1, img_dim)
    returns: (B, img_dim) float32
    """
    B, z_dim = z.shape
    hidden, img_dim = w2.shape

    # --- Lane-dense output: pad img_dim up to a multiple of 128. ------------
    img_pad = ((img_dim + 127) // 128) * 128
    if img_pad != img_dim:
        w2 = jnp.pad(w2, ((0, 0), (0, img_pad - img_dim)))
        b2 = jnp.pad(b2, ((0, 0), (0, img_pad - img_dim)))

    # --- Batch tile: multiple of 8 (sublane), capped at max_tb. --------------
    TB = min(max_tb, max(8, ((B + 7) // 8) * 8))
    B_pad = ((B + TB - 1) // TB) * TB
    if B_pad != B:
        z = jnp.pad(z, ((0, B_pad - B), (0, 0)))

    # --- bf16 MXU operands, f32 biases / accumulation. -----------------------
    z_bf = z.astype(jnp.bfloat16)
    w1_bf = w1.astype(jnp.bfloat16)
    w2_bf = w2.astype(jnp.bfloat16)
    b1_f = b1.astype(jnp.float32)
    b2_f = b2.astype(jnp.float32)

    grid = (B_pad // TB,)

    cost = pl.CostEstimate(
        flops=2 * B_pad * (z_dim * hidden + hidden * img_pad),
        transcendentals=B_pad * img_pad,
        bytes_accessed=(z_bf.size * 2 + w1_bf.size * 2 + w2_bf.size * 2
                        + b1_f.size * 4 + b2_f.size * 4 + B_pad * img_pad * 4),
    )

    out = pl.pallas_call(
        generator_kernel,
        out_shape=jax.ShapeDtypeStruct((B_pad, img_pad), jnp.float32),
        grid=grid,
        in_specs=[
            pl.BlockSpec((TB, z_dim), lambda i: (i, 0)),        # z tile, pipelined
            pl.BlockSpec((z_dim, hidden), lambda i: (0, 0)),    # w1, VMEM-resident
            pl.BlockSpec((1, hidden), lambda i: (0, 0)),        # b1, VMEM-resident
            pl.BlockSpec((hidden, img_pad), lambda i: (0, 0)),  # w2, VMEM-resident
            pl.BlockSpec((1, img_pad), lambda i: (0, 0)),       # b2, VMEM-resident
        ],
        out_specs=pl.BlockSpec((TB, img_pad), lambda i: (i, 0)),
        compiler_params=pltpu.CompilerParams(
            dimension_semantics=("parallel",),
        ),
        cost_estimate=cost,
    )(z_bf, w1_bf, b1_f, w2_bf, b2_f)

    # Strip batch / feature padding.
    return out[:B, :img_dim]


def init_params(key, z_dim, img_dim, hidden=128):
    """Deterministic init mimicking PyTorch nn.Linear default:
    U(-1/sqrt(fan_in), 1/sqrt(fan_in)) for both weight and bias."""
    k1, k2, k3, k4 = jax.random.split(key, 4)
    bound1 = 1.0 / (z_dim ** 0.5)
    bound2 = 1.0 / (hidden ** 0.5)
    # Stored as (in, out) = W.T relative to PyTorch's (out, in).
    w1 = jax.random.uniform(k1, (z_dim, hidden), jnp.float32, -bound1, bound1)
    b1 = jax.random.uniform(k2, (1, hidden), jnp.float32, -bound1, bound1)
    w2 = jax.random.uniform(k3, (hidden, img_dim), jnp.float32, -bound2, bound2)
    b2 = jax.random.uniform(k4, (1, img_dim), jnp.float32, -bound2, bound2)
    return w1, b1, w2, b2


def reference_forward(z, w1, b1, w2, b2):
    h = jnp.maximum(z @ w1 + b1, 0.0)
    return jnp.tanh(h @ w2 + b2)


if __name__ == "__main__":
    key = jax.random.PRNGKey(0)
    k_z, k_p, k_z2 = jax.random.split(key, 3)

    # Small case (matches the module's toy usage).
    batch, z_dim, img_dim = 8, 32, 64
    z = jax.random.normal(k_z, (batch, z_dim), jnp.float32)
    w1, b1, w2, b2 = init_params(k_p, z_dim, img_dim)

    out = jax.block_until_ready(original_generator(z, w1, b1, w2, b2))
    ref = reference_forward(z, w1, b1, w2, b2)
    assert out.shape == (batch, img_dim)
    # bf16 MXU operands -> looser tolerance (tanh-bounded outputs).
    assert jnp.allclose(out, ref, atol=2e-2), "mismatch vs JAX reference (small)"

    # Larger, non-aligned case: exercises batch grid (>1 step), batch padding,
    # and img_dim padding to the next multiple of 128.
    batch2, img_dim2 = 300, 200
    z2 = jax.random.normal(k_z2, (batch2, z_dim), jnp.float32)
    w1b, b1b, w2b, b2b = init_params(k_p, z_dim, img_dim2)
    out2 = jax.block_until_ready(original_generator(z2, w1b, b1b, w2b, b2b))
    ref2 = reference_forward(z2, w1b, b1b, w2b, b2b)
    assert out2.shape == (batch2, img_dim2)
    assert jnp.allclose(out2, ref2, atol=2e-2), "mismatch vs JAX reference (large)"

    print("KERNEL_OK")
</pallas_src>

<mosaic_0001>
module attributes {stable_mosaic.version = 11 : i64} {
  func.func @generator_kernel(%arg0: i32, %arg1: memref<8x32xbf16, #tpu.memory_space<vmem>>, %arg2: memref<32x128xbf16, #tpu.memory_space<vmem>>, %arg3: memref<1x128xf32, #tpu.memory_space<vmem>>, %arg4: memref<128x128xbf16, #tpu.memory_space<vmem>>, %arg5: memref<1x128xf32, #tpu.memory_space<vmem>>, %arg6: memref<8x128xf32, #tpu.memory_space<vmem>>) attributes {dimension_semantics = [#tpu.dimension_semantics<parallel>], iteration_bounds = array<i64: 1>, scalar_prefetch = 0 : i64, scratch_operands = 0 : i64, tpu.core_type = #tpu.core_type<tc>, window_params = [{transform_indices = @transform_0, window_bounds = array<i64: 8, 32>}, {pipeline_mode = #tpu.pipeline_mode<synchronous>, transform_indices = @transform_1, window_bounds = array<i64: 32, 128>}, {pipeline_mode = #tpu.pipeline_mode<synchronous>, transform_indices = @transform_2, window_bounds = array<i64: 1, 128>}, {pipeline_mode = #tpu.pipeline_mode<synchronous>, transform_indices = @transform_3, window_bounds = array<i64: 128, 128>}, {pipeline_mode = #tpu.pipeline_mode<synchronous>, transform_indices = @transform_4, window_bounds = array<i64: 1, 128>}, {transform_indices = @transform_5, window_bounds = array<i64: 8, 128>}]} {
    %c0 = arith.constant 0 : index
    %c0_0 = arith.constant 0 : index
    %0 = vector.load %arg1[%c0, %c0_0] : memref<8x32xbf16, #tpu.memory_space<vmem>>, vector<8x32xbf16>
    %c0_1 = arith.constant 0 : index
    %c0_2 = arith.constant 0 : index
    %1 = vector.load %arg2[%c0_1, %c0_2] : memref<32x128xbf16, #tpu.memory_space<vmem>>, vector<32x128xbf16>
    %cst = arith.constant dense<0.000000e+00> : vector<8x128xf32>
    %2 = tpu.matmul %0, %1, %cst {dimension_numbers = #tpu.dot_dimension_numbers<[1], [0], [0], [1], [0, 0, 1, 1], [], []>} : vector<8x32xbf16>, vector<32x128xbf16>, vector<8x128xf32> -> vector<8x128xf32>
    %c0_3 = arith.constant 0 : index
    %c0_4 = arith.constant 0 : index
    %3 = vector.load %arg3[%c0_3, %c0_4] : memref<1x128xf32, #tpu.memory_space<vmem>>, vector<1x128xf32>
    %4 = vector.broadcast %3 : vector<1x128xf32> to vector<8x128xf32>
    %5 = arith.addf %2, %4 : vector<8x128xf32>
    %cst_5 = arith.constant 0.000000e+00 : f32
    %6 = vector.broadcast %cst_5 : f32 to vector<8x128xf32>
    %7 = arith.maximumf %5, %6 : vector<8x128xf32>
    %8 = arith.truncf %7 : vector<8x128xf32> to vector<8x128xbf16>
    %c0_6 = arith.constant 0 : index
    %c0_7 = arith.constant 0 : index
    %9 = vector.load %arg4[%c0_6, %c0_7] : memref<128x128xbf16, #tpu.memory_space<vmem>>, vector<128x128xbf16>
    %cst_8 = arith.constant dense<0.000000e+00> : vector<8x128xf32>
    %10 = tpu.matmul %8, %9, %cst_8 {dimension_numbers = #tpu.dot_dimension_numbers<[1], [0], [0], [1], [0, 0, 1, 1], [], []>} : vector<8x128xbf16>, vector<128x128xbf16>, vector<8x128xf32> -> vector<8x128xf32>
    %c0_9 = arith.constant 0 : index
    %c0_10 = arith.constant 0 : index
    %11 = vector.load %arg5[%c0_9, %c0_10] : memref<1x128xf32, #tpu.memory_space<vmem>>, vector<1x128xf32>
    %12 = vector.broadcast %11 : vector<1x128xf32> to vector<8x128xf32>
    %13 = arith.addf %10, %12 : vector<8x128xf32>
    %14 = math.tanh %13 : vector<8x128xf32>
    %c0_11 = arith.constant 0 : index
    %c0_12 = arith.constant 0 : index
    %15 = vector.load %arg6[%c0_11, %c0_12] : memref<8x128xf32, #tpu.memory_space<vmem>>, vector<8x128xf32>
    tpu.vector_store %arg6[%c0_11, %c0_12], %14 {strides = array<i32>} : memref<8x128xf32, #tpu.memory_space<vmem>>, vector<8x128xf32>,
    return
  }
  func.func @transform_0(%arg0: i32) -> (i32, i32) {
    %c0_i32 = arith.constant 0 : i32
    %c0_i32_0 = arith.constant 0 : i32
    return %arg0, %c0_i32 : i32, i32
  }
  func.func @transform_1(%arg0: i32) -> (i32, i32) {
    %c0_i32 = arith.constant 0 : i32
    %c0_i32_0 = arith.constant 0 : i32
    %c0_i32_1 = arith.constant 0 : i32
    return %c0_i32, %c0_i32_0 : i32, i32
  }
  func.func @transform_2(%arg0: i32) -> (i32, i32) {
    %c0_i32 = arith.constant 0 : i32
    %c0_i32_0 = arith.constant 0 : i32
    %c0_i32_1 = arith.constant 0 : i32
    return %c0_i32, %c0_i32_0 : i32, i32
  }
  func.func @transform_3(%arg0: i32) -> (i32, i32) {
    %c0_i32 = arith.constant 0 : i32
    %c0_i32_0 = arith.constant 0 : i32
    %c0_i32_1 = arith.constant 0 : i32
    return %c0_i32, %c0_i32_0 : i32, i32
  }
  func.func @transform_4(%arg0: i32) -> (i32, i32) {
    %c0_i32 = arith.constant 0 : i32
    %c0_i32_0 = arith.constant 0 : i32
    %c0_i32_1 = arith.constant 0 : i32
    return %c0_i32, %c0_i32_0 : i32, i32
  }
  func.func @transform_5(%arg0: i32) -> (i32, i32) {
    %c0_i32 = arith.constant 0 : i32
    %c0_i32_0 = arith.constant 0 : i32
    return %arg0, %c0_i32 : i32, i32
  }
}

</mosaic_0001>

<bundles_post_ra>
// kernel: tpu_custom_call.1
= control target key start
LH: loop header
LB: loop body
LE: loop exit
PB: predicated region body
PF: predicated region fallthrough
CT: control target
= control target key end

     0   :  { %10 = vsyncpa [#allocation3], 0  ;;  %s475_s0 = inlined_call_operand.hbm [shape: bf16[8,32], index: 0, kind: input, shape index: {}]   ;;  %s476_s1 = inlined_call_operand.hbm [shape: bf16[32,128], index: 1, kind: input, shape index: {}]   ;;  %s477_s2 = inlined_call_operand.vmem [shape: f32[1,128], index: 2, kind: input, shape index: {}]   ;;  %s478_s3 = inlined_call_operand.hbm [shape: bf16[128,128], index: 3, kind: input, shape index: {}]   ;;  %s479_s4 = inlined_call_operand.vmem [shape: f32[1,128], index: 4, kind: input, shape index: {}]   ;;  %s480_s5 = inlined_call_operand.hbm [shape: f32[8,128], index: 5, kind: output, shape index: {}]  }
   0x1   :  { %11 = vsyncpa [#allocation6], 0 }
   0x2   :  { %12 = vsyncpa [#allocation4], 0  ;;  %s419_s18 = smov [#allocation5]  }
   0x3   :  { %s28_s19 = sshll.u32 %s419_s18, 4  ;;  %s29_s19 = int_to_ptr.vmem [resolvable:$true] %s28_s19 }
   0x4   :  { %s341_s20 = scalar_lea.vmem %s29_s19, 256  ;;  %p346_p1 = scmp.lt.s32.totalorder %s29_s19, %s29_s19 }
   0x5   :  { %p342_p0 = scmp.ne.s32.totalorder %s29_s19, %s341_s20  ;;  %p347_p2 = scmp.lt.s32.totalorder %s341_s20, %s341_s20 }
   0x7   :  { %p348_p3 = por %p347_p2, %p346_p1 }
   0x9   :  { %p349_p4 = pnand %p348_p3, %p342_p0 }
   0xb   :  { %352 = shalt.err (!%p349_p4)
}
   0xc   :  { %s420_s21 = smov 64   ;;  %s421_s22 = smov 4  }
   0xd   :  { %34 = dma.hbm_to_vmem [thread:$0]  %s476_s1, 256, %s29_s19, [#allocation6], %s420_s21, %s420_s21, %s421_s22  }
   0xe   :  { %s422_s25 = smov [#allocation2]   ;;  %s423_s27 = smov [#allocation7]  }
   0xf   :  { %s19_s26 = sshll.u32 %s422_s25, 4  ;;  %s42_s28 = sshll.u32 %s423_s27, 4  ;;  %s20_s26 = int_to_ptr.vmem [resolvable:$true] %s19_s26  ;;  %s43_s28 = int_to_ptr.vmem [resolvable:$true] %s42_s28 }
  0x10   :  { %s361_s29 = scalar_lea.vmem %s20_s26, 64  ;;  %p366_p6 = scmp.lt.s32.totalorder %s20_s26, %s20_s26 }
  0x11   :  { %p362_p5 = scmp.ne.s32.totalorder %s20_s26, %s361_s29  ;;  %p367_p7 = scmp.lt.s32.totalorder %s361_s29, %s361_s29 }
  0x13   :  { %p368_p8 = por %p367_p7, %p366_p6 }
  0x15   :  { %p369_p9 = pnand %p368_p8, %p362_p5 }
  0x17   :  { %372 = shalt.err (!%p369_p9)
}
  0x18   :  { %22 = dma.hbm_to_vmem [thread:$0]  %s475_s0, 64, %s20_s26, [#allocation3]  }
  0x19   :  { %s381_s7 = scalar_lea.vmem %s43_s28, 1024  ;;  %p386_p11 = scmp.lt.s32.totalorder %s43_s28, %s43_s28 }
  0x1a   :  { %p382_p10 = scmp.ne.s32.totalorder %s43_s28, %s381_s7  ;;  %p387_p12 = scmp.lt.s32.totalorder %s381_s7, %s381_s7 }
  0x1c   :  { %p388_p13 = por %p387_p12, %p386_p11 }
  0x1e   :  { %p389_p0 = pnand %p388_p13, %p382_p10 }
  0x20   :  { %392 = shalt.err (!%p389_p0)
}
  0x21   :  { %48 = dma.hbm_to_vmem [thread:$0]  %s478_s3, 1024, %s43_s28, [#allocation6], %s420_s21, %s420_s21, %s421_s22  }
  0x22   :  { %413 = dma.done.wait [#allocation3], 64  }
  0x23   :  { %414 = vsyncadd [#allocation3], 4294967232 }
  0x24   :  { %415 = dma.done.wait [#allocation6], 1280  }
  0x25   :  { %416 = vsyncadd [#allocation6], 4294966016  ;;  %v424_v0 = vmov 0.0   ;;  %vm425_vm0 = vmmov 0   ;;  %v321_v1 = vld [vmem:[#allocation5 + $0x8] sm:$0xff]   ;;  %v322_v2 = vld [vmem:[#allocation5] sm:$0xff]  }
  0x26   :  { %285 = vmatprep.subr.bf16.mxu0 %v424_v0  ;;  %289 = vmatprep.mubr.msk.bf16.mxu0 %vm425_vm0, %v424_v0  ;;  %v323_v3 = vld [vmem:[#allocation7 + $0x38] sm:$0xff]   ;;  %vm85_vm1 = vcmask 261120   ;;  %v324_v4 = vld [vmem:[#allocation7 + $0x30] sm:$0xff]   ;;  %v61_v5 = vld [vmem:[#allocation2] sm:$0xf]  ;;  %s426_s11 = smov [#allocation8]  }
  0x27   :  { %293 = vmatprep.subr.bf16.mxu1 %v424_v0  ;;  %309 = vmatprep.mubr.msk.bf16.mxu1 %vm425_vm0, %v424_v0  ;;  %v325_v6 = vld [vmem:[#allocation7 + $0x28] sm:$0xff]   ;;  %v326_v7 = vld [vmem:[#allocation7 + $0x20] sm:$0xff]   ;;  %v327_v8 = vld [vmem:[#allocation7 + $0x18] sm:$0xff]  }
  0x28   :  { %286 = vmatpush3.bf16.msra.mxu0 %v321_v1  ;;  %294 = vmatpush3.bf16.msra.mxu1 %v323_v3  ;;  %v328_v9 = vld [vmem:[#allocation7 + $0x10] sm:$0xff]   ;;  %v329_v10 = vld [vmem:[#allocation7 + $0x8] sm:$0xff]   ;;  %v330_v11 = vld [vmem:[#allocation7] sm:$0xff]  }
  0x29   :  { %287 = vmatprep.subr.bf16.mxu0 %v424_v0  ;;  %295 = vmatprep.subr.bf16.mxu1 %v424_v0  ;;  %v260_v12 = vld [vmem:[%s477_s2] ss:$0 sm:$0xff]  ;;  %s250_s2 = sshll.u32 %s426_s11, 4  ;;  %s251_s2 = int_to_ptr.vmem [resolvable:$true] %s250_s2 }
  0x2a   :  { %v264_v20 = vld [vmem:[%s479_s4] ss:$0 sm:$0xff]  ;;  %s393_s12 = scalar_lea.vmem %s251_s2, 128  ;;  %p398_p2 = scmp.lt.s32.totalorder %s251_s2, %s251_s2 }
  0x2b   :  { %p394_p1 = scmp.ne.s32.totalorder %s251_s2, %s393_s12  ;;  %p399_p3 = scmp.lt.s32.totalorder %s393_s12, %s393_s12 }
  0x2c   :  { %288 = vmatpush3.bf16.msra.mxu0 %v322_v2  ;;  %296 = vmatpush3.bf16.msra.mxu1 %v324_v4 }
  0x2d   :  { %297 = vmatprep.subr.bf16.mxu1 %v424_v0  ;;  %p400_p4 = por %p399_p3, %p398_p2 }
  0x2f   :  { %290 = vmatmul.mubr.msk.bf16.vlgmr.msra.gmra.mxu0 %vm85_vm1, %v61_v5  ;;  %p401_p5 = pnand %p400_p4, %p394_p1 }
  0x30   :  { %298 = vmatpush3.bf16.msra.mxu1 %v325_v6 }
  0x31   :  { %299 = vmatprep.subr.bf16.mxu1 %v424_v0 }
  0x34   :  { %300 = vmatpush3.bf16.msra.mxu1 %v326_v7 }
  0x35   :  { %301 = vmatprep.subr.bf16.mxu1 %v424_v0 }
  0x38   :  { %302 = vmatpush3.bf16.msra.mxu1 %v327_v8 }
  0x39   :  { %303 = vmatprep.subr.bf16.mxu1 %v424_v0 }
  0x3c   :  { %304 = vmatpush3.bf16.msra.mxu1 %v328_v9 }
  0x3d   :  { %305 = vmatprep.subr.bf16.mxu1 %v424_v0 }
  0x40   :  { %306 = vmatpush3.bf16.msra.mxu1 %v329_v10 }
  0x41   :  { %307 = vmatprep.subr.bf16.mxu1 %v424_v0 }
  0x44   :  { %308 = vmatpush3.bf16.msra.mxu1 %v330_v11 }
  0xef   :  { %v123_v13 = vpop.f32.mrf.mxu0 }
  0xf0   :  { %v124_v14 = vadd.f32 %v260_v12, %v123_v13 }
  0xf1   :  { %v291_v15 = vpop.f32.mrf.mxu0 }
  0xf2   :  { %v129_v16 = vmax.f32 %v124_v14, 0.0 }
  0xf3   :  { %v126_v17 = vpop.f32.mrf.mxu0 }
  0xf4   :  { %v130_v18 = vpack.c.bf16 %v129_v16, %v129_v16 }
  0xf5   :  { %v292_v19 = vpop.f32.mrf.mxu0 }
  0xf6   :  { %310 = vmatmul.mubr.bf16.vlgmr.msra.gmra.mxu1 %v130_v18 }
 0x1b6   :  { %v236_v21 = vpop.f32.mrf.mxu1 }
 0x1b7   :  { %v237_v22 = vadd.f32 %v264_v20, %v236_v21 }
 0x1b8   :  { %v311_v23 = vpop.f32.mrf.mxu1 }
 0x1b9   :  { %331 = vtanh.f32 %v237_v22 }
 0x1ba   :  { %v239_v24 = vpop.f32.mrf.mxu1 }
 0x1bc   :  { %v312_v25 = vpop.f32.mrf.mxu1 }
 0x1c6   :  { %v332_v26 = vpop.eup %331 }
 0x1c7   :  { %243 = vst [vmem:[#allocation8] sm:$0xff] %v332_v26 }
 0x1c8   :  { %404 = shalt.err (!%p401_p5)
}
 0x1c9   :  { %253 = dma.vmem_to_hbm [thread:$0]  %s251_s2, 128, %s480_s5, [#allocation4]  }
 0x1ca   :  { %417 = dma.done.wait [#allocation4], 128  }
 0x1cb   :  { %418 = vsyncadd [#allocation4], 4294967168 }
 0x1cc   :  { %257 = vsyncpa [#allocation3], 1 }
 0x1cd   :  { %258 = vsyncpa [#allocation6], 1 }
 0x1ce   :  { %259 = vsyncpa [#allocation4], 1 }

</bundles_post_ra>
